<compile_context>
chip_gen: v7x
topology: tpu7x:2x2x1
jax: 0.10.0
libtpu: 0.0.40
codegen_flags: <defaults>
</compile_context>

<pallas_src>
import functools

import jax
import jax.numpy as jnp
from jax.experimental import pallas as pl
from jax.experimental.pallas import tpu as pltpu


def _round_up(x, m):
    return ((x + m - 1) // m) * m


def _ce_center_kernel(logits_ref, labels_ref, feats_ref, c_hi_ref, c_lo_ref, out_ref,
                      *, lambda_center: float, batch_size: int, tile_rows: int):
    """One batch tile: emits sum_i [ (lse_i - logits_i[y_i]) + lambda * ||f_i - c_{y_i}||^2 ]."""
    tb = tile_rows

    # Row validity for the (possibly ragged) last batch tile. jnp.where with the raw loaded
    # values also sanitizes any garbage in the out-of-bounds region of the last DMA'd block,
    # so no NaN/Inf can leak into the reductions.
    row_ids = jax.lax.broadcasted_iota(jnp.int32, (tb, 1), 0) + pl.program_id(0) * tile_rows
    valid = row_ids < batch_size                                          # (TB, 1) bool

    logits = jnp.where(valid, logits_ref[...].astype(jnp.float32), 0.0)   # (TB, C)
    feats = jnp.where(valid, feats_ref[...].astype(jnp.float32), 0.0)     # (TB, D)
    labels = jnp.where(valid, labels_ref[...], 0)                         # (TB, 1) int32

    num_classes = logits.shape[1]

    # Label mask via iota compare (pure VPU, no gather).
    # NOTE: out-of-range labels (label >= C) silently give picked = 0 (CE = lse), unlike
    # PyTorch which raises; acceptable for a loss kernel.
    class_ids = jax.lax.broadcasted_iota(jnp.int32, (tb, num_classes), 1)
    label_mask = class_ids == labels                                      # (TB, C) bool

    # --- Cross entropy per row (numerically stable) ---
    row_max = jnp.max(logits, axis=1, keepdims=True)
    shifted = logits - row_max
    lse_shift = jnp.log(jnp.sum(jnp.exp(shifted), axis=1, keepdims=True))
    picked_shift = jnp.sum(jnp.where(label_mask, shifted, 0.0), axis=1, keepdims=True)
    ce_rows = lse_shift - picked_shift                                    # (TB, 1)

    # --- Center loss per row: ||f_i - centers[y_i]||^2 ---
    # One-hot selection on the MXU in bf16 (0/1 are exact in bf16). Centers come as a hi/lo
    # bf16 split, so the selected rows match f32 centers to ~2^-16 relative error while both
    # matmuls run at full bf16 MXU rate. Centers are VMEM-resident across the whole grid.
    one_hot = label_mask.astype(jnp.bfloat16)                             # (TB, C)
    centers_sel = (
        jnp.dot(one_hot, c_hi_ref[...], preferred_element_type=jnp.float32)
        + jnp.dot(one_hot, c_lo_ref[...], preferred_element_type=jnp.float32)
    )                                                                     # (TB, D) f32
    diff = feats - centers_sel
    center_rows = jnp.sum(diff * diff, axis=1, keepdims=True)             # (TB, 1)

    rows = ce_rows + jnp.float32(lambda_center) * center_rows
    partial = jnp.sum(jnp.where(valid, rows, 0.0))

    # Lane-dense (1, 8, 128) partial-sum block -> unmasked stores; the wrapper does the tiny
    # (num_tiles)-element final reduction so the batch grid axis can stay "parallel".
    out_ref[...] = jnp.full(out_ref.shape, partial, dtype=jnp.float32)


def _vmem_budget_bytes():
    """Generation-aware VMEM budget: ~80% of physical VMEM (>= 32 MiB fallback)."""
    cap = None
    try:
        info = pltpu.get_tpu_info()
        cap = getattr(info, "vmem_capacity_bytes", None) or getattr(info, "vmem_size_bytes", None)
    except Exception:
        cap = None
    if not cap:
        cap = 64 * 1024 * 1024  # conservative fallback (v7x per-TC physical size)
    return max(32 * 1024 * 1024, int(cap * 0.8))


def _choose_tile_rows(B, C, D, logits_bytes, feats_bytes, budget, centers_vmem_bytes):
    """Derive the batch tile from the VMEM budget; balance tiles so the last isn't mostly empty."""
    per_row = (
        2 * (C * logits_bytes + D * feats_bytes + 4)   # double-buffered DMA input tiles
        + 4 * 4 * C                                    # f32 logits/shifted/exp + bf16 one-hot temps
        + 3 * 4 * D                                    # f32 feats / selected-centers / diff temps
    )
    avail = max(budget - centers_vmem_bytes - (4 << 20), 0)   # margin for outputs / misc scratch
    tb_cap = (avail // max(per_row, 1)) // 8 * 8
    tb_cap = max(8, min(2048, tb_cap))
    if B <= tb_cap:
        return B                                       # single full-dim block is always legal
    num_tiles = pl.cdiv(B, tb_cap)
    return _round_up(pl.cdiv(B, num_tiles), 8)


def ce_center_criterion(logits, labels, features, centers, lambda_center=0.01):
    """Scalar total loss = CE(logits, labels) + lambda * CenterLoss(features, labels; centers)."""
    B, C = logits.shape
    D = features.shape[-1]

    # Hi/lo bf16 split of the (small, done-once) centers table: one_hot @ c_hi + one_hot @ c_lo
    # reproduces the f32 center rows to ~2^-16 relative error at bf16 MXU rate.
    centers_f32 = centers.astype(jnp.float32)
    c_hi = centers_f32.astype(jnp.bfloat16)
    c_lo = (centers_f32 - c_hi.astype(jnp.float32)).astype(jnp.bfloat16)

    labels_col = labels.astype(jnp.int32).reshape(B, 1)

    budget = _vmem_budget_bytes()
    centers_vmem = 2 * 2 * (C * D * 2)   # hi + lo bf16, conservatively counted double-buffered
    TB = _choose_tile_rows(B, C, D, logits.dtype.itemsize, features.dtype.itemsize,
                           budget, centers_vmem)
    num_tiles = pl.cdiv(B, TB)

    kernel = functools.partial(
        _ce_center_kernel,
        lambda_center=float(lambda_center),
        batch_size=B,
        tile_rows=TB,
    )

    bytes_accessed = (B * C * logits.dtype.itemsize + B * D * features.dtype.itemsize
                      + B * 4 + 2 * C * D * 2 + num_tiles * 8 * 128 * 4)
    cost = pl.CostEstimate(
        flops=4 * num_tiles * TB * C * D + 10 * B * C + 4 * B * D,
        transcendentals=B * C + B,
        bytes_accessed=bytes_accessed,
    )

    out = pl.pallas_call(
        kernel,
        out_shape=jax.ShapeDtypeStruct((num_tiles, 8, 128), jnp.float32),
        grid=(num_tiles,),
        in_specs=[
            pl.BlockSpec((TB, C), lambda i: (i, 0)),    # logits tile (native dtype, full class dim)
            pl.BlockSpec((TB, 1), lambda i: (i, 0)),    # labels tile (int32 column)
            pl.BlockSpec((TB, D), lambda i: (i, 0)),    # features tile (native dtype)
            pl.BlockSpec((C, D), lambda i: (0, 0)),     # centers hi: constant index -> VMEM-resident
            pl.BlockSpec((C, D), lambda i: (0, 0)),     # centers lo: constant index -> VMEM-resident
        ],
        out_specs=pl.BlockSpec((1, 8, 128), lambda i: (i, 0, 0)),
        compiler_params=pltpu.CompilerParams(
            dimension_semantics=("parallel",),
            vmem_limit_bytes=budget,
        ),
        cost_estimate=cost,
    )(logits, labels_col, features, c_hi, c_lo)

    return jnp.sum(out[:, 0, 0]) / jnp.float32(B)


def _reference(logits, labels, features, centers, lambda_center=0.01):
    # Pure-JAX reference for sanity checking.
    logits = logits.astype(jnp.float32)
    lse = jax.scipy.special.logsumexp(logits, axis=1)
    picked = jnp.take_along_axis(logits, labels[:, None], axis=1)[:, 0]
    ce = jnp.mean(lse - picked)
    csel = centers[labels]
    center = jnp.mean(jnp.sum((features.astype(jnp.float32) - csel.astype(jnp.float32)) ** 2, axis=1))
    return ce + lambda_center * center


if __name__ == "__main__":
    key = jax.random.PRNGKey(0)
    k1, k2, k3, k4 = jax.random.split(key, 4)

    B, C, D = 8, 16, 32          # batch, num_classes, feature dim
    lambda_center = 0.01

    logits = jax.random.normal(k1, (B, C), dtype=jnp.float32)
    labels = jax.random.randint(k2, (B,), 0, C, dtype=jnp.int32)
    features = jax.random.normal(k3, (B, D), dtype=jnp.float32)
    # Deterministic synthetic class-center parameters (CenterLoss learnable weight).
    centers = jax.random.normal(k4, (C, D), dtype=jnp.float32)

    total = ce_center_criterion(logits, labels, features, centers, lambda_center)
    total = jax.block_until_ready(total)

    ref = _reference(logits, labels, features, centers, lambda_center)
    assert jnp.allclose(total, ref, rtol=1e-5, atol=1e-5), (total, ref)

    print("KERNEL_OK")
</pallas_src>

<mosaic_0001>
module attributes {stable_mosaic.version = 11 : i64} {
  func.func @_ce_center_kernel(%arg0: i32, %arg1: memref<8x16xf32, #tpu.memory_space<vmem>>, %arg2: memref<8x1xi32, #tpu.memory_space<vmem>>, %arg3: memref<8x32xf32, #tpu.memory_space<vmem>>, %arg4: memref<16x32xbf16, #tpu.memory_space<vmem>>, %arg5: memref<16x32xbf16, #tpu.memory_space<vmem>>, %arg6: memref<1x8x128xf32, #tpu.memory_space<vmem>>) attributes {dimension_semantics = [#tpu.dimension_semantics<parallel>], iteration_bounds = array<i64: 1>, scalar_prefetch = 0 : i64, scratch_operands = 0 : i64, tpu.core_type = #tpu.core_type<tc>, window_params = [{transform_indices = @transform_0, window_bounds = array<i64: 8, 16>}, {transform_indices = @transform_1, window_bounds = array<i64: 8, 1>}, {transform_indices = @transform_2, window_bounds = array<i64: 8, 32>}, {pipeline_mode = #tpu.pipeline_mode<synchronous>, transform_indices = @transform_3, window_bounds = array<i64: 16, 32>}, {pipeline_mode = #tpu.pipeline_mode<synchronous>, transform_indices = @transform_4, window_bounds = array<i64: 16, 32>}, {transform_indices = @transform_5, window_bounds = array<i64: 1, 8, 128>}]} {
    %0 = tpu.iota {dimensions = array<i32: 0>} : vector<8x1xi32>
    %c8_i32 = arith.constant 8 : i32
    %1 = arith.muli %arg0, %c8_i32 : i32
    %2 = vector.broadcast %1 : i32 to vector<8x1xi32>
    %3 = arith.addi %0, %2 : vector<8x1xi32>
    %c8_i32_0 = arith.constant 8 : i32
    %4 = vector.broadcast %c8_i32_0 : i32 to vector<8x1xi32>
    %5 = arith.cmpi slt, %3, %4 : vector<8x1xi32>
    %c0 = arith.constant 0 : index
    %c0_1 = arith.constant 0 : index
    %6 = vector.load %arg1[%c0, %c0_1] : memref<8x16xf32, #tpu.memory_space<vmem>>, vector<8x16xf32>
    %cst = arith.constant 0.000000e+00 : f32
    %7 = vector.shape_cast %5 : vector<8x1xi1> to vector<8x1xi1>
    %8 = vector.broadcast %7 : vector<8x1xi1> to vector<8x16xi1>
    %9 = vector.broadcast %cst : f32 to vector<8x16xf32>
    %10 = arith.select %8, %6, %9 : vector<8x16xi1>, vector<8x16xf32>
    %c0_2 = arith.constant 0 : index
    %c0_3 = arith.constant 0 : index
    %11 = vector.load %arg3[%c0_2, %c0_3] : memref<8x32xf32, #tpu.memory_space<vmem>>, vector<8x32xf32>
    %cst_4 = arith.constant 0.000000e+00 : f32
    %12 = vector.shape_cast %5 : vector<8x1xi1> to vector<8x1xi1>
    %13 = vector.broadcast %12 : vector<8x1xi1> to vector<8x32xi1>
    %14 = vector.broadcast %cst_4 : f32 to vector<8x32xf32>
    %15 = arith.select %13, %11, %14 : vector<8x32xi1>, vector<8x32xf32>
    %c0_5 = arith.constant 0 : index
    %c0_6 = arith.constant 0 : index
    %16 = vector.load %arg2[%c0_5, %c0_6] : memref<8x1xi32, #tpu.memory_space<vmem>>, vector<8x1xi32>
    %c0_i32 = arith.constant 0 : i32
    %17 = vector.broadcast %c0_i32 : i32 to vector<8x1xi32>
    %18 = arith.select %5, %16, %17 : vector<8x1xi1>, vector<8x1xi32>
    %19 = tpu.iota {dimensions = array<i32: 1>} : vector<8x16xi32>
    %20 = vector.broadcast %18 : vector<8x1xi32> to vector<8x16xi32>
    %21 = arith.cmpi eq, %19, %20 : vector<8x16xi32>
    %cst_7 = arith.constant dense<0xFF800000> : vector<8xf32>
    %22 = vector.multi_reduction <maximumf>, %10, %cst_7 [1] : vector<8x16xf32> to vector<8xf32>
    %23 = vector.shape_cast %22 : vector<8xf32> to vector<8x1xf32>
    %24 = vector.broadcast %23 : vector<8x1xf32> to vector<8x16xf32>
    %25 = arith.subf %10, %24 : vector<8x16xf32>
    %26 = math.exp %25 : vector<8x16xf32>
    %cst_8 = arith.constant dense<0.000000e+00> : vector<8xf32>
    %27 = vector.multi_reduction <add>, %26, %cst_8 [1] : vector<8x16xf32> to vector<8xf32>
    %28 = vector.shape_cast %27 : vector<8xf32> to vector<8x1xf32>
    %29 = math.log %28 : vector<8x1xf32>
    %cst_9 = arith.constant 0.000000e+00 : f32
    %30 = vector.broadcast %cst_9 : f32 to vector<8x16xf32>
    %31 = arith.select %21, %25, %30 : vector<8x16xi1>, vector<8x16xf32>
    %cst_10 = arith.constant dense<0.000000e+00> : vector<8xf32>
    %32 = vector.multi_reduction <add>, %31, %cst_10 [1] : vector<8x16xf32> to vector<8xf32>
    %33 = vector.shape_cast %32 : vector<8xf32> to vector<8x1xf32>
    %34 = arith.subf %29, %33 : vector<8x1xf32>
    %35 = arith.extui %21 : vector<8x16xi1> to vector<8x16xi32>
    %36 = arith.sitofp %35 : vector<8x16xi32> to vector<8x16xf32>
    %37 = arith.truncf %36 : vector<8x16xf32> to vector<8x16xbf16>
    %c0_11 = arith.constant 0 : index
    %c0_12 = arith.constant 0 : index
    %38 = vector.load %arg4[%c0_11, %c0_12] : memref<16x32xbf16, #tpu.memory_space<vmem>>, vector<16x32xbf16>
    %cst_13 = arith.constant dense<0.000000e+00> : vector<8x32xf32>
    %39 = tpu.matmul %37, %38, %cst_13 {dimension_numbers = #tpu.dot_dimension_numbers<[1], [0], [0], [1], [0, 0, 1, 1], [], []>} : vector<8x16xbf16>, vector<16x32xbf16>, vector<8x32xf32> -> vector<8x32xf32>
    %c0_14 = arith.constant 0 : index
    %c0_15 = arith.constant 0 : index
    %40 = vector.load %arg5[%c0_14, %c0_15] : memref<16x32xbf16, #tpu.memory_space<vmem>>, vector<16x32xbf16>
    %cst_16 = arith.constant dense<0.000000e+00> : vector<8x32xf32>
    %41 = tpu.matmul %37, %40, %cst_16 {dimension_numbers = #tpu.dot_dimension_numbers<[1], [0], [0], [1], [0, 0, 1, 1], [], []>} : vector<8x16xbf16>, vector<16x32xbf16>, vector<8x32xf32> -> vector<8x32xf32>
    %42 = arith.addf %39, %41 : vector<8x32xf32>
    %43 = arith.subf %15, %42 : vector<8x32xf32>
    %44 = arith.mulf %43, %43 : vector<8x32xf32>
    %cst_17 = arith.constant dense<0.000000e+00> : vector<8xf32>
    %45 = vector.multi_reduction <add>, %44, %cst_17 [1] : vector<8x32xf32> to vector<8xf32>
    %46 = vector.shape_cast %45 : vector<8xf32> to vector<8x1xf32>
    %cst_18 = arith.constant 0.00999999977 : f32
    %47 = vector.broadcast %cst_18 : f32 to vector<8x1xf32>
    %48 = arith.mulf %47, %46 : vector<8x1xf32>
    %49 = arith.addf %34, %48 : vector<8x1xf32>
    %cst_19 = arith.constant 0.000000e+00 : f32
    %50 = vector.broadcast %cst_19 : f32 to vector<8x1xf32>
    %51 = arith.select %5, %49, %50 : vector<8x1xi1>, vector<8x1xf32>
    %52 = vector.shape_cast %51 : vector<8x1xf32> to vector<1x8x1xf32>
    %cst_20 = arith.constant dense<0.000000e+00> : vector<1xf32>
    %53 = vector.multi_reduction <add>, %52, %cst_20 [1, 2] : vector<1x8x1xf32> to vector<1xf32>
    %54 = vector.shape_cast %53 : vector<1xf32> to vector<1x1x1xf32>
    %55 = vector.extract %54[0, 0, 0] : f32 from vector<1x1x1xf32>
    %56 = vector.broadcast %55 : f32 to vector<1x8x128xf32>
    %c0_21 = arith.constant 0 : index
    %c0_22 = arith.constant 0 : index
    %c0_23 = arith.constant 0 : index
    %57 = vector.load %arg6[%c0_21, %c0_22, %c0_23] : memref<1x8x128xf32, #tpu.memory_space<vmem>>, vector<1x8x128xf32>
    tpu.vector_store %arg6[%c0_21, %c0_22, %c0_23], %56 {strides = array<i32>} : memref<1x8x128xf32, #tpu.memory_space<vmem>>, vector<1x8x128xf32>,
    return
  }
  func.func @transform_0(%arg0: i32) -> (i32, i32) {
    %c0_i32 = arith.constant 0 : i32
    %c0_i32_0 = arith.constant 0 : i32
    return %arg0, %c0_i32 : i32, i32
  }
  func.func @transform_1(%arg0: i32) -> (i32, i32) {
    %c0_i32 = arith.constant 0 : i32
    %c0_i32_0 = arith.constant 0 : i32
    return %arg0, %c0_i32 : i32, i32
  }
  func.func @transform_2(%arg0: i32) -> (i32, i32) {
    %c0_i32 = arith.constant 0 : i32
    %c0_i32_0 = arith.constant 0 : i32
    return %arg0, %c0_i32 : i32, i32
  }
  func.func @transform_3(%arg0: i32) -> (i32, i32) {
    %c0_i32 = arith.constant 0 : i32
    %c0_i32_0 = arith.constant 0 : i32
    %c0_i32_1 = arith.constant 0 : i32
    return %c0_i32, %c0_i32_0 : i32, i32
  }
  func.func @transform_4(%arg0: i32) -> (i32, i32) {
    %c0_i32 = arith.constant 0 : i32
    %c0_i32_0 = arith.constant 0 : i32
    %c0_i32_1 = arith.constant 0 : i32
    return %c0_i32, %c0_i32_0 : i32, i32
  }
  func.func @transform_5(%arg0: i32) -> (i32, i32, i32) {
    %c0_i32 = arith.constant 0 : i32
    %c0_i32_0 = arith.constant 0 : i32
    %c0_i32_1 = arith.constant 0 : i32
    return %arg0, %c0_i32, %c0_i32_0 : i32, i32, i32
  }
}

</mosaic_0001>

<bundles_post_ra>
// kernel: tpu_custom_call.1
= control target key start
LH: loop header
LB: loop body
LE: loop exit
PB: predicated region body
PF: predicated region fallthrough
CT: control target
= control target key end

     0   :  { %10 = vsyncpa [#allocation3], 0  ;;  %s376_s0 = inlined_call_operand.vmem [shape: f32[8,16], index: 0, kind: input, shape index: {}]   ;;  %s377_s1 = inlined_call_operand.vmem [shape: s32[8,1], index: 1, kind: input, shape index: {}]   ;;  %s378_s2 = inlined_call_operand.vmem [shape: f32[8,32], index: 2, kind: input, shape index: {}]   ;;  %s379_s3 = inlined_call_operand.hbm [shape: bf16[16,32], index: 3, kind: input, shape index: {}]   ;;  %s380_s4 = inlined_call_operand.vmem [shape: bf16[16,32], index: 4, kind: input, shape index: {}]   ;;  %s381_s5 = inlined_call_operand.hbm [shape: f32[1,8,128], index: 5, kind: output, shape index: {}]  }
   0x1   :  { %11 = vsyncpa [#allocation4], 0  ;;  %s298_s18 = smov [#allocation2]   ;;  %s250_s22 = scalar_lea.hbm %s379_s3, 128 }
   0x2   :  { %s23_s19 = sshll.u32 %s298_s18, 4  ;;  %p251_p0 = scmp.ne.s32.totalorder %s379_s3, %s250_s22  ;;  %s24_s19 = int_to_ptr.vmem [resolvable:$true] %s23_s19 }
   0x3   :  { %p254_p1 = scmp.lt.u32.totalorder %s250_s22, %s379_s3 }
   0x5   :  { %p256_p2 = pnand %p254_p1, %p251_p0 }
   0x7   :  { %259 = shalt.err (!%p256_p2)
}
   0x8   :  { %s260_s27 = scalar_lea.vmem %s24_s19, 128  ;;  %p265_p4 = scmp.lt.s32.totalorder %s24_s19, %s24_s19 }
   0x9   :  { %p261_p3 = scmp.ne.s32.totalorder %s24_s19, %s260_s27  ;;  %p266_p5 = scmp.lt.s32.totalorder %s260_s27, %s260_s27 }
   0xb   :  { %p267_p6 = por %p266_p5, %p265_p4 }
   0xd   :  { %p268_p7 = pnand %p267_p6, %p261_p3 }
   0xf   :  { %271 = shalt.err (!%p268_p7)
}
  0x10   :  { %s299_s28 = smov 64   ;;  %s300_s29 = smov 4  }
  0x11   :  { %29 = dma.hbm_to_vmem [thread:$0]  %s379_s3, 128, %s24_s19, [#allocation3], %s299_s28, %s299_s28, %s300_s29  }
  0x12   :  { %294 = dma.done.wait [#allocation3], 128  }
  0x13   :  { %295 = vsyncadd [#allocation3], 4294967168  ;;  %v301_v0 = vmov 0   ;;  %v302_v1 = vmov 0.0   ;;  %v48_v2 = vld [vmem:[%s377_s1] sm:$0xff]  ;;  %vm303_vm0 = vmmov 0   ;;  %v50_v7 = vlaneseq }
  0x14   :  { %243 = vset.pattern.permute.xlu0 %v301_v0  ;;  %221 = vmatprep.subr.bf16.mxu1 %v302_v1  ;;  %v244_v3 = vld [vmem:[%s380_s4] sm:$0xff]   ;;  %vm56_vm1 = vcmask 130048   ;;  %vm177_vm3 = vcmask 261120   ;;  %vm184_vm4 = vcmask 7168  }
  0x15   :  { %227 = vmatprep.subr.bf16.mxu0 %v302_v1  ;;  %53 = vperm.xlu0 %243, %v48_v2   ;;  %v245_v4 = vld [vmem:[#allocation2] sm:$0xff]   ;;  %v51_v8 = vand.u32 127, %v50_v7 }
  0x16   :  { %222 = vmatpush3.bf16.msra.mxu1 %v244_v3  ;;  %228 = vmatpush3.bf16.msra.mxu0 %v245_v4  ;;  %v42_v5 = vld [vmem:[%s376_s0] sm:$0xff] }
  0x17   :  { %223 = vmatprep.mubr.msk.bf16.mxu1 %vm303_vm0, %v302_v1  ;;  %229 = vmatprep.mubr.msk.bf16.mxu0 %vm303_vm0, %v302_v1  ;;  %v57_v6 = vsel %vm56_vm1, %v42_v5, -inf  ;;  %v46_v20 = vld [vmem:[%s378_s2] sm:$0xff]  ;;  %s304_s2 = smov [#allocation5]  }
  0x18   :  { %s203_s4 = sshll.u32 %s304_s2, 4  ;;  %s204_s4 = int_to_ptr.vmem [resolvable:$true] %s203_s4 }
  0x19   :  { %s272_s13 = scalar_lea.vmem %s204_s4, 128  ;;  %p277_p9 = scmp.lt.s32.totalorder %s204_s4, %s204_s4 }
  0x1a   :  { %p273_p8 = scmp.ne.s32.totalorder %s204_s4, %s272_s13  ;;  %p278_p10 = scmp.lt.s32.totalorder %s272_s13, %s272_s13 }
  0x1c   :  { %p279_p11 = por %p278_p10, %p277_p9 }
  0x1e   :  { %p280_p12 = pnand %p279_p11, %p273_p8 }
  0x34   :  { %58 = vmax.xlane.f32.xlu0 %v57_v6 }
  0x94   :  { %v54_v9 = vpop.permute.xlu0 %53 }
  0x95   :  { %vm55_vm2 = vcmp.eq.s32.totalorder %v51_v8, %v54_v9 }
  0x96   :  { %v212_v10 = vsel %vm55_vm2, 1.0, %v302_v1 }
  0x97   :  { %v75_v11 = vpack.c.bf16 %v212_v10, %v212_v10 }
  0x99   :  { %224 = vmatmul.mubr.msk.bf16.vlgmr.msra.gmra.mrb[0].mxu1 %vm56_vm1, %v75_v11  ;;  %230 = vmatmul.mubr.msk.bf16.vlgmr.msra.gmra.mrb[0].mxu0 %vm56_vm1, %v75_v11 }
  0xc1   :  { %v59_v12 = vpop.xlane.xlu0 %58 }
  0xc2   :  { %v60_v13 = vsub.f32 %v42_v5, %v59_v12 }
  0xc4   :  { %v61_v14 = vmul.f32 1.442695, %v60_v13  ;;  %v68_v17 = vsel %vm55_vm2, %v60_v13, 0.0 }
  0xc5   :  { %v69_v18 = vsel %vm56_vm1, %v68_v17, 0.0 }
  0xc6   :  { %246 = vpow2.f32 %v61_v14 }
  0xd0   :  { %v247_v15 = vpop.eup %246 }
  0xd1   :  { %v63_v16 = vsel %vm56_vm1, %v247_v15, 0.0 }
  0xd2   :  { %64 = vadd.xlane.f32.xlu1 %v63_v16 }
  0xd6   :  { %70 = vadd.xlane.f32.xlu1 %v69_v18 }
 0x15f   :  { %v65_v32 = vpop.xlane.xlu1 %64 }
 0x160   :  { %248 = vlog2.f32 %v65_v32 }
 0x163   :  { %v71_v34 = vpop.xlane.xlu1 %70 }
 0x16a   :  { %v249_v33 = vpop.eup %248 }
 0x16b   :  { %v67_v35 = vmul.f32 0.6931472, %v249_v33 }
 0x16c   :  { %v123_v19 = vpop.f32.mrb[0].mxu1  ;;  %v169_v21 = vpop.f32.mrb[0].mxu0 }
 0x16d   :  { %v170_v22 = vadd.f32 %v169_v21, %v123_v19  ;;  %v225_v23 = vpop.f32.mrb[1].mxu1  ;;  %v231_v24 = vpop.f32.mrb[1].mxu0  ;;  %v72_v37 = vsub.f32 %v67_v35, %v71_v34 }
 0x16e   :  { %v126_v25 = vpop.f32.mrb[2].mxu1  ;;  %v172_v26 = vpop.f32.mrb[2].mxu0 }
 0x16f   :  { %v175_v27 = vsub.f32 %v46_v20, %v170_v22  ;;  %v226_v28 = vpop.f32.mrb[3].mxu1  ;;  %v232_v29 = vpop.f32.mrb[3].mxu0 }
 0x171   :  { %v176_v30 = vmul.f32 %v175_v27, %v175_v27 }
 0x173   :  { %v178_v31 = vsel %vm177_vm3, %v176_v30, 0.0 }
 0x174   :  { %179 = vadd.xlane.f32.xlu1 %v178_v31 }
 0x201   :  { %v180_v36 = vpop.xlane.xlu1 %179 }
 0x202   :  { %v181_v38 = vmul.f32 0.01, %v180_v36 }
 0x204   :  { %v182_v39 = vadd.f32 %v181_v38, %v72_v37 }
 0x206   :  { %v185_v40 = vsel %vm184_vm4, %v182_v39, 0.0 }
 0x207   :  { %186 = vadd.xlane.f32.xlu1 %v185_v40 }
 0x294   :  { %v187_v41 = vpop.xlane.xlu1 %186 }
 0x295   :  { %v188_v42 = vrot.slane %v187_v41, 4 }
 0x297   :  { %v189_v43 = vadd.f32 %v188_v42, %v187_v41 }
 0x299   :  { %v190_v44 = vrot.slane %v189_v43, 2 }
 0x29b   :  { %v191_v45 = vadd.f32 %v190_v44, %v189_v43 }
 0x29d   :  { %v192_v46 = vrot.slane %v191_v45, 1 }
 0x29f   :  { %v193_v47 = vadd.f32 %v192_v46, %v191_v45 }
 0x2a1   :  { %234 = vpush %v193_v47 }
 0x2d2   :  { %s235_s12 = spop %234 }
 0x2d3   :  { %v195_v48 = vstv %s235_s12 }
 0x2d4   :  { %196 = vst [vmem:[#allocation5] sm:$0xff] %v195_v48 }
 0x2d5   :  { %283 = shalt.err (!%p280_p12)
}
 0x2d6   :  { %s284_s16 = scalar_lea.hbm %s381_s5, 128 }
 0x2d7   :  { %p285_p13 = scmp.ne.s32.totalorder %s381_s5, %s284_s16  ;;  %p288_p0 = scmp.lt.u32.totalorder %s284_s16, %s381_s5 }
 0x2d9   :  { %p290_p1 = pnand %p288_p0, %p285_p13 }
 0x2db   :  { %293 = shalt.err (!%p290_p1)
}
 0x2dc   :  { %206 = dma.vmem_to_hbm [thread:$0]  %s204_s4, 128, %s381_s5, [#allocation4]  }
 0x2dd   :  { %296 = dma.done.wait [#allocation4], 128  }
 0x2de   :  { %297 = vsyncadd [#allocation4], 4294967168 }
 0x2df   :  { %210 = vsyncpa [#allocation3], 1 }
 0x2e0   :  { %211 = vsyncpa [#allocation4], 1 }

</bundles_post_ra>
